<compile_context>
chip_gen: v7x
topology: tpu7x:2x2x1
jax: 0.10.0
libtpu: 0.0.40
codegen_flags: <defaults>
</compile_context>

<pallas_src>
import jax
import jax.numpy as jnp
from jax.experimental import pallas as pl
from jax.experimental.pallas import tpu as pltpu


# ----------------------------------------------------------------------------
# Kernel: fused HBM -> HBM DMA copy of both tensors (DMA engines only,
# zero TensorCore compute).
# ----------------------------------------------------------------------------
def _dma_identity_kernel(a_hbm, b_hbm, oa_hbm, ob_hbm, sem):
    cp_a = pltpu.make_async_copy(a_hbm, oa_hbm, sem.at[0])
    cp_b = pltpu.make_async_copy(b_hbm, ob_hbm, sem.at[1])
    # Issue both DMAs so they overlap, then wait on both.
    cp_a.start()
    cp_b.start()
    cp_a.wait()
    cp_b.wait()


def _nbytes(x):
    return x.size * jnp.dtype(x.dtype).itemsize


def _pallas_identity_materialize(a, b):
    """Single fused pallas_call: pure HBM->HBM DMA copies (fresh buffers)."""
    bytes_accessed = 2 * (_nbytes(a) + _nbytes(b))  # read + write, both tensors
    return pl.pallas_call(
        _dma_identity_kernel,
        out_shape=(
            jax.ShapeDtypeStruct(a.shape, a.dtype),
            jax.ShapeDtypeStruct(b.shape, b.dtype),
        ),
        in_specs=[
            pl.BlockSpec(memory_space=pl.ANY),
            pl.BlockSpec(memory_space=pl.ANY),
        ],
        out_specs=(
            pl.BlockSpec(memory_space=pl.ANY),
            pl.BlockSpec(memory_space=pl.ANY),
        ),
        scratch_shapes=[pltpu.SemaphoreType.DMA((2,))],
        cost_estimate=pl.CostEstimate(
            flops=0, transcendentals=0, bytes_accessed=bytes_accessed
        ),
    )(a, b)


# ----------------------------------------------------------------------------
# Module forward
# ----------------------------------------------------------------------------
def id_forward(x_intt, x_mvtx, materialize=False):
    """Pallas implementation of Id.forward: returns (x_intt, x_mvtx).

    Default: zero-cost identity (no kernel, no copy) — optimal on v5e/v6e/v7x.
    materialize=True: one fused Pallas kernel that produces fresh output
    buffers via DMA-engine HBM->HBM copies (no VMEM round-trip, no aliasing).
    """
    if not materialize:
        return (x_intt, x_mvtx)
    return _pallas_identity_materialize(x_intt, x_mvtx)


if __name__ == "__main__":
    key = jax.random.PRNGKey(0)
    k1, k2 = jax.random.split(key)
    # Small node-feature-like shapes: [num_nodes, num_features]
    x_intt = jax.random.normal(k1, (16, 128), dtype=jnp.float32)
    x_mvtx = jax.random.normal(k2, (32, 128), dtype=jnp.float32)

    # Preferred (zero-cost) path: identity returns inputs unchanged.
    out_intt, out_mvtx = id_forward(x_intt, x_mvtx)
    jax.block_until_ready((out_intt, out_mvtx))
    assert out_intt.shape == x_intt.shape and out_intt.dtype == x_intt.dtype
    assert out_mvtx.shape == x_mvtx.shape and out_mvtx.dtype == x_mvtx.dtype
    assert bool(jnp.all(out_intt == x_intt))
    assert bool(jnp.all(out_mvtx == x_mvtx))

    # Materialized path: single fused Pallas kernel, pure HBM->HBM DMA.
    m_intt, m_mvtx = id_forward(x_intt, x_mvtx, materialize=True)
    jax.block_until_ready((m_intt, m_mvtx))
    assert m_intt.shape == x_intt.shape and m_intt.dtype == x_intt.dtype
    assert m_mvtx.shape == x_mvtx.shape and m_mvtx.dtype == x_mvtx.dtype
    assert bool(jnp.all(m_intt == x_intt))
    assert bool(jnp.all(m_mvtx == x_mvtx))

    print("KERNEL_OK")
</pallas_src>

<mosaic_0001>
module attributes {stable_mosaic.version = 11 : i64} {
  func.func @_dma_identity_kernel(%arg0: memref<16x128xf32, #tpu.memory_space<any>>, %arg1: memref<32x128xf32, #tpu.memory_space<any>>, %arg2: memref<16x128xf32, #tpu.memory_space<any>>, %arg3: memref<32x128xf32, #tpu.memory_space<any>>, %arg4: memref<2x!tpu.dma_semaphore, #tpu.memory_space<semaphore_mem>>) attributes {dimension_semantics = [], scalar_prefetch = 0 : i64, scratch_operands = 1 : i64, tpu.core_type = #tpu.core_type<tc>} {
    %c0_i32 = arith.constant 0 : i32
    %0 = tpu.memref_slice %arg4[%c0_i32] : memref<2x!tpu.dma_semaphore, #tpu.memory_space<semaphore_mem>> -> memref<1x!tpu.dma_semaphore, #tpu.memory_space<semaphore_mem>>
    %1 = tpu.memref_squeeze %0 : memref<1x!tpu.dma_semaphore, #tpu.memory_space<semaphore_mem>> -> memref<!tpu.dma_semaphore, #tpu.memory_space<semaphore_mem>>
    tpu.enqueue_dma source(%arg0 : memref<16x128xf32, #tpu.memory_space<any>>) target(%arg2 : memref<16x128xf32, #tpu.memory_space<any>>) target_semaphore(%1 : memref<!tpu.dma_semaphore, #tpu.memory_space<semaphore_mem>>)
    %c1_i32 = arith.constant 1 : i32
    %2 = tpu.memref_slice %arg4[%c1_i32] : memref<2x!tpu.dma_semaphore, #tpu.memory_space<semaphore_mem>> -> memref<1x!tpu.dma_semaphore, #tpu.memory_space<semaphore_mem>>
    %3 = tpu.memref_squeeze %2 : memref<1x!tpu.dma_semaphore, #tpu.memory_space<semaphore_mem>> -> memref<!tpu.dma_semaphore, #tpu.memory_space<semaphore_mem>>
    tpu.enqueue_dma source(%arg1 : memref<32x128xf32, #tpu.memory_space<any>>) target(%arg3 : memref<32x128xf32, #tpu.memory_space<any>>) target_semaphore(%3 : memref<!tpu.dma_semaphore, #tpu.memory_space<semaphore_mem>>)
    %c0_i32_0 = arith.constant 0 : i32
    %4 = tpu.memref_slice %arg4[%c0_i32_0] : memref<2x!tpu.dma_semaphore, #tpu.memory_space<semaphore_mem>> -> memref<1x!tpu.dma_semaphore, #tpu.memory_space<semaphore_mem>>
    %5 = tpu.memref_squeeze %4 : memref<1x!tpu.dma_semaphore, #tpu.memory_space<semaphore_mem>> -> memref<!tpu.dma_semaphore, #tpu.memory_space<semaphore_mem>>
    tpu.wait_dma2 semaphore(%5 : memref<!tpu.dma_semaphore, #tpu.memory_space<semaphore_mem>>) src(%arg0 : memref<16x128xf32, #tpu.memory_space<any>>) dst(%arg2 : memref<16x128xf32, #tpu.memory_space<any>>)
    %c1_i32_1 = arith.constant 1 : i32
    %6 = tpu.memref_slice %arg4[%c1_i32_1] : memref<2x!tpu.dma_semaphore, #tpu.memory_space<semaphore_mem>> -> memref<1x!tpu.dma_semaphore, #tpu.memory_space<semaphore_mem>>
    %7 = tpu.memref_squeeze %6 : memref<1x!tpu.dma_semaphore, #tpu.memory_space<semaphore_mem>> -> memref<!tpu.dma_semaphore, #tpu.memory_space<semaphore_mem>>
    tpu.wait_dma2 semaphore(%7 : memref<!tpu.dma_semaphore, #tpu.memory_space<semaphore_mem>>) src(%arg1 : memref<32x128xf32, #tpu.memory_space<any>>) dst(%arg3 : memref<32x128xf32, #tpu.memory_space<any>>)
    return
  }
}

</mosaic_0001>

<bundles_post_ra>
// kernel: tpu_custom_call.1
= control target key start
LH: loop header
LB: loop body
LE: loop exit
PB: predicated region body
PF: predicated region fallthrough
CT: control target
= control target key end

     0   :  { %s66_s12 = smov [#allocation2]   ;;  %s67_s13 = smov [#allocation3]   ;;  %s103_s0 = inlined_call_operand.hbm [shape: f32[16,128], index: 0, kind: input, shape index: {}]   ;;  %s104_s2 = inlined_call_operand.hbm [shape: f32[16,128], index: 2, kind: output, shape index: {0}]   ;;  %s105_s1 = inlined_call_operand.hbm [shape: f32[32,128], index: 1, kind: input, shape index: {}]   ;;  %s106_s3 = inlined_call_operand.hbm [shape: f32[32,128], index: 3, kind: output, shape index: {1}]  }
   0x1   :  { %s68_s14 = smov 0   ;;  %s69_s19 = smov [#allocation2 + $0x1]  }
   0x2   :  { %21 = dma.general %s103_s0, 256, %s104_s2, %s66_s12, %s67_s13, [#allocation4], %s68_s14, 0  }
   0x3   :  { %s70_s20 = smov [#allocation5]  }
   0x4   :  { %35 = dma.general %s105_s1, 512, %s106_s3, %s69_s19, %s70_s20, [#allocation6], %s68_s14, 0  }
   0x5   :  { %62 = dma.done.wait [#allocation2], 256 }
   0x6   :  { %63 = vsyncadd [#allocation2], 4294967040 }
   0x7   :  { %64 = dma.done.wait [#allocation2 + $0x1], 512 }
   0x8   :  { %65 = vsyncadd [#allocation2 + $0x1], 4294966784 }
   0x9   :  { %42 = vsyncmov [#allocation2] }
   0xc   :  { %s43_s25 = vpop.sfrf %42 }
   0xd   :  { %p55_p0 = scmp.ne.s32.totalorder %s43_s25, 0 }
   0xf   :  { %47 = shalt.err (%p55_p0)  }
  0x10   :  { %49 = vsyncmov [#allocation2 + $0x1] }
  0x13   :  { %s50_s26 = vpop.sfrf %49 }
  0x14   :  { %p56_p1 = scmp.ne.s32.totalorder %s50_s26, 0 }
  0x16   :  { %54 = shalt.err (%p56_p1)  }

</bundles_post_ra>
